<compile_context>
chip_gen: v6e
topology: v6e:2x2x1
jax: 0.10.0
libtpu: 0.0.40
codegen_flags: <defaults>
</compile_context>

<pallas_src>
import math
import functools

import jax
import jax.numpy as jnp
from jax import lax
from jax.experimental import pallas as pl
from jax.experimental.pallas import tpu as pltpu


_INV_SQRT2 = 1.0 / math.sqrt(2.0)


def _round_up(x, m):
    return ((x + m - 1) // m) * m


def _glu_tiling(in_dim, out_dim, *, block_n, block_k):
    """Tile / padding derivation shared by param prep and forward."""
    n128 = _round_up(out_dim, 128)          # lane-dense output columns
    tn = min(block_n, n128)
    n_pad = _round_up(out_dim, tn)
    k128 = _round_up(in_dim, 128)
    tk = min(block_k, k128)
    k_pad = _round_up(k128, tk)
    return tn, n_pad, tk, k_pad


def _glu_kernel(x_ref, w_ref, b_ref, o_ref, acc_ref):
    """One (row-tile, N-tile) of GEGLU with K-axis accumulation.

    x_ref:   (tm, tk)
    w_ref:   (tk, 2*tn)   fused [W1^T tile | W2^T tile]
    b_ref:   (1, 2*tn)    fused [b1 tile | b2 tile]
    o_ref:   (tm, tn)
    acc_ref: (tm, 2*tn)   f32 accumulator scratch
    """
    k = pl.program_id(2)

    @pl.when(k == 0)
    def _():
        acc_ref[...] = jnp.zeros_like(acc_ref)

    # Single MXU pass per (x tile, fused-weight tile).
    acc_ref[...] += jnp.dot(
        x_ref[...], w_ref[...], preferred_element_type=jnp.float32)

    @pl.when(k == pl.num_programs(2) - 1)
    def _():
        h = acc_ref[...] + b_ref[...].astype(jnp.float32)
        tn = o_ref.shape[-1]
        h1 = h[:, :tn]
        h2 = h[:, tn:]
        # Exact GELU (erf form) — matches torch.nn.GELU() default.
        gate = 0.5 * h2 * (1.0 + lax.erf(h2 * _INV_SQRT2))
        o_ref[...] = (h1 * gate).astype(o_ref.dtype)


def glu_prepare_params(w1, b1, w2, b2, *, block_n=256, block_k=1024,
                       param_dtype=None):
    """Pack PyTorch-layout nn.Linear params into fused, padded, tiled buffers.

    w1, w2: (out_dim, in_dim); b1, b2: (out_dim,).
    Returns (w_fused, b_fused):
      w_fused: (k_pad, 2*n_pad)  — per N-tile columns are [W1^T tile | W2^T tile]
      b_fused: (1, 2*n_pad)      — matching [b1 tile | b2 tile] layout
    Call once at init; the jitted forward then avoids per-call transposes.
    Optionally cast params to bf16 (param_dtype=jnp.bfloat16) for MXU speed /
    halved weight HBM traffic; accumulation stays f32 in the kernel.
    """
    out_dim, in_dim = w1.shape
    tn, n_pad, tk, k_pad = _glu_tiling(in_dim, out_dim,
                                       block_n=block_n, block_k=block_k)
    if param_dtype is not None:
        w1, w2 = w1.astype(param_dtype), w2.astype(param_dtype)
        b1, b2 = b1.astype(param_dtype), b2.astype(param_dtype)

    def pad_t(w):  # (out_dim, in_dim) -> transposed, zero-padded (k_pad, n_pad)
        return jnp.pad(w, ((0, n_pad - out_dim), (0, k_pad - in_dim))).T

    w1t, w2t = pad_t(w1), pad_t(w2)
    b1p = jnp.pad(b1, (0, n_pad - out_dim))
    b2p = jnp.pad(b2, (0, n_pad - out_dim))

    n_tiles = n_pad // tn
    w_fused = jnp.concatenate(
        [w1t.reshape(k_pad, n_tiles, tn), w2t.reshape(k_pad, n_tiles, tn)],
        axis=-1).reshape(k_pad, n_tiles * 2 * tn)
    b_fused = jnp.concatenate(
        [b1p.reshape(n_tiles, tn), b2p.reshape(n_tiles, tn)],
        axis=-1).reshape(1, n_tiles * 2 * tn)
    return w_fused, b_fused


@functools.partial(
    jax.jit,
    static_argnames=("in_dim", "out_dim", "block_n", "block_k", "block_rows"))
def glu_forward(x, w_fused, b_fused, *, in_dim, out_dim,
                block_n=256, block_k=1024, block_rows=256):
    """GEGLU forward. x: (..., in_dim); params from glu_prepare_params."""
    assert block_n % 128 == 0 and block_k % 128 == 0 and block_rows % 8 == 0
    tn, n_pad, tk, k_pad = _glu_tiling(in_dim, out_dim,
                                       block_n=block_n, block_k=block_k)
    assert w_fused.shape == (k_pad, 2 * n_pad), \
        "params were not prepared with the same block_n/block_k"
    assert b_fused.shape == (1, 2 * n_pad)

    lead = x.shape[:-1]
    rows = math.prod(lead)
    x2d = x.reshape(rows, in_dim)

    tm = min(block_rows, _round_up(rows, 8))
    rows_pad = _round_up(rows, tm)
    x2d = jnp.pad(x2d, ((0, rows_pad - rows), (0, k_pad - in_dim)))

    # Grid: N tiles outermost (weight block index changes slowest), rows in the
    # middle, K (reduction) innermost with an accumulator.
    grid = (n_pad // tn, rows_pad // tm, k_pad // tk)

    out = pl.pallas_call(
        _glu_kernel,
        out_shape=jax.ShapeDtypeStruct((rows_pad, n_pad), x.dtype),
        grid_spec=pltpu.PrefetchScalarGridSpec(
            num_scalar_prefetch=0,
            grid=grid,
            in_specs=[
                pl.BlockSpec((tm, tk), lambda j, i, k: (i, k)),        # x
                pl.BlockSpec((tk, 2 * tn), lambda j, i, k: (k, j)),    # fused W
                pl.BlockSpec((1, 2 * tn), lambda j, i, k: (0, j)),     # fused b
            ],
            out_specs=pl.BlockSpec((tm, tn), lambda j, i, k: (i, j)),
            scratch_shapes=[pltpu.VMEM((tm, 2 * tn), jnp.float32)],
        ),
        compiler_params=pltpu.CompilerParams(
            dimension_semantics=("parallel", "parallel", "arbitrary"),
            vmem_limit_bytes=32 * 1024 * 1024,
        ),
    )(x2d, w_fused, b_fused)

    out = out[:rows, :out_dim]
    return out.reshape(*lead, out_dim)


def _init_linear_params(key, out_dim, in_dim, dtype=jnp.float32):
    """Deterministic init mimicking nn.Linear defaults: U(-1/sqrt(in), 1/sqrt(in))."""
    k_w, k_b = jax.random.split(key)
    bound = 1.0 / math.sqrt(in_dim)
    w = jax.random.uniform(k_w, (out_dim, in_dim), dtype, minval=-bound, maxval=bound)
    b = jax.random.uniform(k_b, (out_dim,), dtype, minval=-bound, maxval=bound)
    return w, b


if __name__ == "__main__":
    key = jax.random.PRNGKey(0)
    k_x, k_l1, k_l2, k_x2, k_l3, k_l4 = jax.random.split(key, 6)

    def ref_glu(x, w1, b1, w2, b2):
        h1 = x @ w1.T + b1
        h2 = x @ w2.T + b2
        return h1 * (0.5 * h2 * (1.0 + lax.erf(h2 * _INV_SQRT2)))

    # --- Test 1: small shapes matching the module usage (padded to 128 lanes).
    batch, seq, input_dim, output_dim = 2, 8, 32, 32
    x = jax.random.normal(k_x, (batch, seq, input_dim), dtype=jnp.float32)
    w1, b1 = _init_linear_params(k_l1, output_dim, input_dim)
    w2, b2 = _init_linear_params(k_l2, output_dim, input_dim)

    wf, bf = glu_prepare_params(w1, b1, w2, b2)
    out = glu_forward(x, wf, bf, in_dim=input_dim, out_dim=output_dim)
    out = jax.block_until_ready(out)
    assert out.shape == (batch, seq, output_dim)
    assert jnp.allclose(out, ref_glu(x, w1, b1, w2, b2), atol=1e-5, rtol=1e-5)

    # --- Test 2: non-multiple-of-128 dims + K-tiled accumulator path.
    bsz2, seq2, in_dim2, out_dim2 = 3, 11, 200, 300
    x2 = jax.random.normal(k_x2, (bsz2, seq2, in_dim2), dtype=jnp.float32)
    w1b, b1b = _init_linear_params(k_l3, out_dim2, in_dim2)
    w2b, b2b = _init_linear_params(k_l4, out_dim2, in_dim2)

    wf2, bf2 = glu_prepare_params(w1b, b1b, w2b, b2b, block_k=128)
    out2 = glu_forward(x2, wf2, bf2, in_dim=in_dim2, out_dim=out_dim2,
                       block_k=128)
    out2 = jax.block_until_ready(out2)
    assert out2.shape == (bsz2, seq2, out_dim2)
    assert jnp.allclose(out2, ref_glu(x2, w1b, b1b, w2b, b2b),
                        atol=1e-3, rtol=1e-3)

    print("KERNEL_OK")
</pallas_src>

<mosaic_0001>
module attributes {stable_mosaic.version = 11 : i64} {
  func.func @_glu_kernel(%arg0: i32, %arg1: i32, %arg2: i32, %arg3: memref<16x128xf32, #tpu.memory_space<vmem>>, %arg4: memref<128x256xf32, #tpu.memory_space<vmem>>, %arg5: memref<1x256xf32, #tpu.memory_space<vmem>>, %arg6: memref<16x128xf32, #tpu.memory_space<vmem>>, %arg7: memref<16x256xf32, #tpu.memory_space<vmem>>) attributes {dimension_semantics = [#tpu.dimension_semantics<parallel>, #tpu.dimension_semantics<parallel>, #tpu.dimension_semantics<arbitrary>], iteration_bounds = array<i64: 1, 1, 1>, scalar_prefetch = 0 : i64, scratch_operands = 1 : i64, tpu.core_type = #tpu.core_type<tc>, window_params = [{transform_indices = @transform_0, window_bounds = array<i64: 16, 128>}, {transform_indices = @transform_1, window_bounds = array<i64: 128, 256>}, {transform_indices = @transform_2, window_bounds = array<i64: 1, 256>}, {transform_indices = @transform_3, window_bounds = array<i64: 16, 128>}]} {
    %c0_i32 = arith.constant 0 : i32
    %0 = arith.cmpi eq, %arg2, %c0_i32 : i32
    %1 = arith.extui %0 : i1 to i32
    %c0_i32_0 = arith.constant 0 : i32
    %2 = arith.cmpi ne, %1, %c0_i32_0 : i32
    scf.if %2 {
      %cst_10 = arith.constant 0.000000e+00 : f32
      %12 = vector.broadcast %cst_10 : f32 to vector<16x256xf32>
      %c0_11 = arith.constant 0 : index
      %c0_12 = arith.constant 0 : index
      %13 = vector.load %arg7[%c0_11, %c0_12] : memref<16x256xf32, #tpu.memory_space<vmem>>, vector<16x256xf32>
      tpu.vector_store %arg7[%c0_11, %c0_12], %12 {strides = array<i32>} : memref<16x256xf32, #tpu.memory_space<vmem>>, vector<16x256xf32>,
    } else {
    }
    %c0 = arith.constant 0 : index
    %c0_1 = arith.constant 0 : index
    %3 = vector.load %arg7[%c0, %c0_1] : memref<16x256xf32, #tpu.memory_space<vmem>>, vector<16x256xf32>
    %c0_2 = arith.constant 0 : index
    %c0_3 = arith.constant 0 : index
    %4 = vector.load %arg3[%c0_2, %c0_3] : memref<16x128xf32, #tpu.memory_space<vmem>>, vector<16x128xf32>
    %c0_4 = arith.constant 0 : index
    %c0_5 = arith.constant 0 : index
    %5 = vector.load %arg4[%c0_4, %c0_5] : memref<128x256xf32, #tpu.memory_space<vmem>>, vector<128x256xf32>
    %cst = arith.constant dense<0.000000e+00> : vector<16x256xf32>
    %6 = tpu.matmul %4, %5, %cst {dimension_numbers = #tpu.dot_dimension_numbers<[1], [0], [0], [1], [0, 0, 1, 1], [], []>} : vector<16x128xf32>, vector<128x256xf32>, vector<16x256xf32> -> vector<16x256xf32>
    %7 = arith.addf %3, %6 : vector<16x256xf32>
    %c0_6 = arith.constant 0 : index
    %c0_7 = arith.constant 0 : index
    %8 = vector.load %arg7[%c0_6, %c0_7] : memref<16x256xf32, #tpu.memory_space<vmem>>, vector<16x256xf32>
    tpu.vector_store %arg7[%c0_6, %c0_7], %7 {strides = array<i32>} : memref<16x256xf32, #tpu.memory_space<vmem>>, vector<16x256xf32>,
    %c0_i32_8 = arith.constant 0 : i32
    %9 = arith.cmpi eq, %arg2, %c0_i32_8 : i32
    %10 = arith.extui %9 : i1 to i32
    %c0_i32_9 = arith.constant 0 : i32
    %11 = arith.cmpi ne, %10, %c0_i32_9 : i32
    scf.if %11 {
      %c0_10 = arith.constant 0 : index
      %c0_11 = arith.constant 0 : index
      %12 = vector.load %arg7[%c0_10, %c0_11] : memref<16x256xf32, #tpu.memory_space<vmem>>, vector<16x256xf32>
      %c0_12 = arith.constant 0 : index
      %c0_13 = arith.constant 0 : index
      %13 = vector.load %arg5[%c0_12, %c0_13] : memref<1x256xf32, #tpu.memory_space<vmem>>, vector<1x256xf32>
      %14 = vector.broadcast %13 : vector<1x256xf32> to vector<16x256xf32>
      %15 = arith.addf %12, %14 : vector<16x256xf32>
      %16 = vector.extract_strided_slice %15 {offsets = [0, 0], sizes = [16, 128], strides = [1, 1]} : vector<16x256xf32> to vector<16x128xf32>
      %17 = vector.extract_strided_slice %15 {offsets = [0, 128], sizes = [16, 128], strides = [1, 1]} : vector<16x256xf32> to vector<16x128xf32>
      %cst_14 = arith.constant 5.000000e-01 : f32
      %18 = vector.broadcast %cst_14 : f32 to vector<16x128xf32>
      %19 = arith.mulf %18, %17 : vector<16x128xf32>
      %cst_15 = arith.constant 0.707106769 : f32
      %20 = vector.broadcast %cst_15 : f32 to vector<16x128xf32>
      %21 = arith.mulf %17, %20 : vector<16x128xf32>
      %22 = math.erf %21 : vector<16x128xf32>
      %cst_16 = arith.constant 1.000000e+00 : f32
      %23 = vector.broadcast %cst_16 : f32 to vector<16x128xf32>
      %24 = arith.addf %23, %22 : vector<16x128xf32>
      %25 = arith.mulf %19, %24 : vector<16x128xf32>
      %26 = arith.mulf %16, %25 : vector<16x128xf32>
      %c0_17 = arith.constant 0 : index
      %c0_18 = arith.constant 0 : index
      %27 = vector.load %arg6[%c0_17, %c0_18] : memref<16x128xf32, #tpu.memory_space<vmem>>, vector<16x128xf32>
      tpu.vector_store %arg6[%c0_17, %c0_18], %26 {strides = array<i32>} : memref<16x128xf32, #tpu.memory_space<vmem>>, vector<16x128xf32>,
    } else {
    }
    return
  }
  func.func @transform_0(%arg0: i32, %arg1: i32, %arg2: i32) -> (i32, i32) {
    %c0_i32 = arith.constant 0 : i32
    return %arg1, %arg2 : i32, i32
  }
  func.func @transform_1(%arg0: i32, %arg1: i32, %arg2: i32) -> (i32, i32) {
    %c0_i32 = arith.constant 0 : i32
    return %arg2, %arg0 : i32, i32
  }
  func.func @transform_2(%arg0: i32, %arg1: i32, %arg2: i32) -> (i32, i32) {
    %c0_i32 = arith.constant 0 : i32
    %c0_i32_0 = arith.constant 0 : i32
    return %c0_i32, %arg0 : i32, i32
  }
  func.func @transform_3(%arg0: i32, %arg1: i32, %arg2: i32) -> (i32, i32) {
    %c0_i32 = arith.constant 0 : i32
    return %arg1, %arg0 : i32, i32
  }
}

</mosaic_0001>

<bundles_post_ra>
// kernel: glu_forward.1
= control target key start
LH: loop header
LB: loop body
LE: loop exit
PB: predicated region body
PF: predicated region fallthrough
CT: control target
= control target key end

     0   :  { %8 = vsyncpa [#allocation4], 0  ;;  %s263_s12 = smov [#allocation3]   ;;  %s305_s0 = inlined_call_operand.vmem [shape: f32[16,128], index: 0, kind: input, shape index: {}]   ;;  %s306_s1 = inlined_call_operand.hbm [shape: f32[128,256], index: 1, kind: input, shape index: {}]   ;;  %s307_s2 = inlined_call_operand.vmem [shape: f32[1,256], index: 2, kind: input, shape index: {}]   ;;  %s308_s3 = inlined_call_operand.vmem [shape: f32[16,128], index: 3, kind: output, shape index: {}]  }
   0x1   :  { %s16_s13 = sshll.u32 %s263_s12, 4  ;;  %s17_s13 = int_to_ptr.vmem [resolvable:$true] %s16_s13 }
   0x2   :  { %s249_s14 = scalar_lea.vmem %s17_s13, 4096  ;;  %p254_p1 = scmp.lt.s32.totalorder %s17_s13, %s17_s13 }
   0x3   :  { %p250_p0 = scmp.ne.s32.totalorder %s17_s13, %s249_s14  ;;  %p255_p2 = scmp.lt.s32.totalorder %s249_s14, %s249_s14 }
   0x5   :  { %p256_p3 = por %p255_p2, %p254_p1 }
   0x7   :  { %p257_p4 = pnand %p256_p3, %p250_p0 }
   0x9   :  { %260 = shalt.err (!%p257_p4)
}
   0xa   :  { %s264_s15 = smov 256   ;;  %s265_s16 = smov 16  }
   0xb   :  { %22 = dma.hbm_to_vmem [thread:$0]  %s306_s1, 4096, %s17_s13, [#allocation4], %s264_s15, %s264_s15, %s265_s16  }
   0xc   :  { %261 = dma.done.wait [#allocation4], 4096  }
   0xd   :  { %262 = vsyncadd [#allocation4], 4294963200  ;;  %v266_v0 = vmov 0.0   ;;  %v73_v1 = vld [vmem:[#allocation3 + $0xf8] sm:$0xff]  ;;  %v72_v2 = vld [vmem:[#allocation3 + $0xf0] sm:$0xff]  ;;  %v168_v35 = vlaneseq }
   0xe   :  { %138 = vmatprep.mubr.f32.mxu0 %v266_v0  ;;  %144 = vmatprep.mubr.f32.mxu1 %v266_v0  ;;  %v71_v3 = vld [vmem:[#allocation3 + $0xe8] sm:$0xff]  ;;  %v70_v4 = vld [vmem:[#allocation3 + $0xe0] sm:$0xff]  ;;  %v69_v5 = vld [vmem:[#allocation3 + $0xd8] sm:$0xff] }
   0xf   :  { %74 = vmatprep.subr.mxu0 %v73_v1  ;;  %201 = vmatprep.subr.mxu1 %v73_v1  ;;  %v68_v6 = vld [vmem:[#allocation3 + $0xd0] sm:$0xff]  ;;  %v67_v7 = vld [vmem:[#allocation3 + $0xc8] sm:$0xff]  ;;  %v66_v8 = vld [vmem:[#allocation3 + $0xc0] sm:$0xff]  ;;  %v169_v36 = vshrl.u32 %v168_v35, 7 }
  0x10   :  { %75 = vmatpush1.msra.mxu0 %v72_v2  ;;  %217 = vmatpush1.msra.mxu1 %v72_v2  ;;  %v65_v9 = vld [vmem:[#allocation3 + $0xb8] sm:$0xff]  ;;  %v64_v10 = vld [vmem:[#allocation3 + $0xb0] sm:$0xff]  ;;  %v63_v11 = vld [vmem:[#allocation3 + $0xa8] sm:$0xff] }
  0x11   :  { %76 = vmatprep.subr.mxu0 %v71_v3  ;;  %202 = vmatprep.subr.mxu1 %v71_v3  ;;  %v62_v12 = vld [vmem:[#allocation3 + $0xa0] sm:$0xff]  ;;  %v61_v13 = vld [vmem:[#allocation3 + $0x98] sm:$0xff]  ;;  %v60_v14 = vld [vmem:[#allocation3 + $0x90] sm:$0xff]  ;;  %v174_v37 = vsub.s32 1, %v169_v36  ;;  %v170_v48 = vsub.s32 0, %v169_v36 }
  0x12   :  { %77 = vmatpush1.msra.mxu0 %v70_v4  ;;  %218 = vmatpush1.msra.mxu1 %v70_v4  ;;  %v59_v15 = vld [vmem:[#allocation3 + $0x88] sm:$0xff]  ;;  %v58_v16 = vld [vmem:[#allocation3 + $0x80] sm:$0xff]  ;;  %v57_v17 = vld [vmem:[#allocation3 + $0x78] sm:$0xff] }
  0x13   :  { %78 = vmatprep.subr.mxu0 %v69_v5  ;;  %203 = vmatprep.subr.mxu1 %v69_v5  ;;  %v56_v18 = vld [vmem:[#allocation3 + $0x70] sm:$0xff]  ;;  %v55_v19 = vld [vmem:[#allocation3 + $0x68] sm:$0xff]  ;;  %v54_v20 = vld [vmem:[#allocation3 + $0x60] sm:$0xff] }
  0x14   :  { %79 = vmatpush1.msra.mxu0 %v68_v6  ;;  %219 = vmatpush1.msra.mxu1 %v68_v6  ;;  %v53_v21 = vld [vmem:[#allocation3 + $0x58] sm:$0xff]  ;;  %v52_v22 = vld [vmem:[#allocation3 + $0x50] sm:$0xff]  ;;  %v51_v23 = vld [vmem:[#allocation3 + $0x48] sm:$0xff] }
  0x15   :  { %80 = vmatprep.subr.mxu0 %v67_v7  ;;  %204 = vmatprep.subr.mxu1 %v67_v7  ;;  %v50_v24 = vld [vmem:[#allocation3 + $0x40] sm:$0xff]  ;;  %v49_v25 = vld [vmem:[#allocation3 + $0x38] sm:$0xff]  ;;  %v48_v26 = vld [vmem:[#allocation3 + $0x30] sm:$0xff] }
  0x16   :  { %81 = vmatpush1.msra.mxu0 %v66_v8  ;;  %220 = vmatpush1.msra.mxu1 %v66_v8  ;;  %v47_v27 = vld [vmem:[#allocation3 + $0x28] sm:$0xff]  ;;  %v46_v28 = vld [vmem:[#allocation3 + $0x20] sm:$0xff]  ;;  %v45_v29 = vld [vmem:[#allocation3 + $0x18] sm:$0xff] }
  0x17   :  { %82 = vmatprep.subr.mxu0 %v65_v9  ;;  %205 = vmatprep.subr.mxu1 %v65_v9  ;;  %v44_v30 = vld [vmem:[#allocation3 + $0x10] sm:$0xff]  ;;  %v43_v31 = vld [vmem:[#allocation3 + $0x8] sm:$0xff]  ;;  %v42_v32 = vld [vmem:[#allocation3] sm:$0xff] }
  0x18   :  { %83 = vmatpush1.msra.mxu0 %v64_v10  ;;  %221 = vmatpush1.msra.mxu1 %v64_v10  ;;  %v40_v33 = vld [vmem:[%s305_s0] sm:$0xff]  ;;  %v41_v34 = vld [vmem:[%s305_s0 + $0x8] sm:$0xff] }
  0x19   :  { %84 = vmatprep.subr.mxu0 %v63_v11  ;;  %206 = vmatprep.subr.mxu1 %v63_v11  ;;  %v166_v38 = vld [vmem:[%s307_s2] sm:$0x3] }
  0x1a   :  { %85 = vmatpush1.msra.mxu0 %v62_v12  ;;  %222 = vmatpush1.msra.mxu1 %v62_v12  ;;  %v175_v39 = vrot.slane %v166_v38, %v174_v37  ;;  %v171_v49 = vrot.slane %v166_v38, %v170_v48 }
  0x1b   :  { %86 = vmatprep.subr.mxu0 %v61_v13  ;;  %207 = vmatprep.subr.mxu1 %v61_v13 }
  0x1c   :  { %87 = vmatpush1.msra.mxu0 %v60_v14  ;;  %223 = vmatpush1.msra.mxu1 %v60_v14 }
  0x1d   :  { %88 = vmatprep.subr.mxu0 %v59_v15  ;;  %208 = vmatprep.subr.mxu1 %v59_v15 }
  0x1e   :  { %89 = vmatpush1.msra.mxu0 %v58_v16  ;;  %224 = vmatpush1.msra.mxu1 %v58_v16 }
  0x1f   :  { %90 = vmatprep.subr.mxu0 %v57_v17  ;;  %209 = vmatprep.subr.mxu1 %v57_v17 }
  0x20   :  { %91 = vmatpush1.msra.mxu0 %v56_v18  ;;  %225 = vmatpush1.msra.mxu1 %v56_v18 }
  0x21   :  { %92 = vmatprep.subr.mxu0 %v55_v19  ;;  %210 = vmatprep.subr.mxu1 %v55_v19 }
  0x22   :  { %93 = vmatpush1.msra.mxu0 %v54_v20  ;;  %226 = vmatpush1.msra.mxu1 %v54_v20 }
  0x23   :  { %94 = vmatprep.subr.mxu0 %v53_v21  ;;  %211 = vmatprep.subr.mxu1 %v53_v21 }
  0x24   :  { %95 = vmatpush1.msra.mxu0 %v52_v22  ;;  %227 = vmatpush1.msra.mxu1 %v52_v22 }
  0x25   :  { %96 = vmatprep.subr.mxu0 %v51_v23  ;;  %212 = vmatprep.subr.mxu1 %v51_v23 }
  0x26   :  { %97 = vmatpush1.msra.mxu0 %v50_v24  ;;  %228 = vmatpush1.msra.mxu1 %v50_v24 }
  0x27   :  { %98 = vmatprep.subr.mxu0 %v49_v25  ;;  %213 = vmatprep.subr.mxu1 %v49_v25 }
  0x28   :  { %99 = vmatpush1.msra.mxu0 %v48_v26  ;;  %229 = vmatpush1.msra.mxu1 %v48_v26 }
  0x29   :  { %100 = vmatprep.subr.mxu0 %v47_v27  ;;  %214 = vmatprep.subr.mxu1 %v47_v27 }
  0x2a   :  { %101 = vmatpush1.msra.mxu0 %v46_v28  ;;  %230 = vmatpush1.msra.mxu1 %v46_v28 }
  0x2b   :  { %102 = vmatprep.subr.mxu0 %v45_v29  ;;  %215 = vmatprep.subr.mxu1 %v45_v29 }
  0x2c   :  { %103 = vmatpush1.msra.mxu0 %v44_v30  ;;  %231 = vmatpush1.msra.mxu1 %v44_v30 }
  0x2d   :  { %104 = vmatprep.subr.mxu0 %v43_v31  ;;  %216 = vmatprep.subr.mxu1 %v43_v31 }
  0x2e   :  { %105 = vmatpush1.msra.mxu0 %v42_v32  ;;  %232 = vmatpush1.msra.mxu1 %v42_v32 }
  0x2f   :  { %139 = vmatmul.mubr.f32.vlgmr.msra.gmra.mxu0 %v40_v33  ;;  %145 = vmatmul.mubr.f32.vlgmr.msra.gmra.mxu1 %v41_v34 }
  0xef   :  { %v140_v40 = vpop.f32.mrf.mxu0  ;;  %v146_v41 = vpop.f32.mrf.mxu1 }
  0xf0   :  { %v178_v56 = vadd.f32 %v171_v49, %v140_v40  ;;  %v180_v58 = vadd.f32 %v171_v49, %v146_v41 }
  0xf1   :  { %v142_v42 = vpop.f32.mrf.mxu0  ;;  %v148_v43 = vpop.f32.mrf.mxu1 }
  0xf2   :  { %v179_v44 = vadd.f32 %v175_v39, %v142_v42  ;;  %v181_v45 = vadd.f32 %v175_v39, %v148_v43 }
  0xf4   :  { %v184_v46 = vmul.f32 0.70710677, %v179_v44  ;;  %v185_v47 = vmul.f32 0.70710677, %v181_v45  ;;  %v182_v52 = vmul.f32 0.5, %v179_v44  ;;  %v183_v54 = vmul.f32 0.5, %v181_v45 }
  0xf6   :  { %237 = verf.f32 %v184_v46 }
  0xf7   :  { %239 = verf.f32 %v185_v47 }
 0x103   :  { %v238_v50 = vpop.eup %237 }
 0x104   :  { %v240_v51 = vpop.eup %239  ;;  %v188_v53 = vadd.f32 1.0, %v238_v50 }
 0x105   :  { %v189_v55 = vadd.f32 1.0, %v240_v51 }
 0x106   :  { %v190_v57 = vmul.f32 %v188_v53, %v182_v52 }
 0x107   :  { %v191_v59 = vmul.f32 %v189_v55, %v183_v54 }
 0x108   :  { %v192_v60 = vmul.f32 %v190_v57, %v178_v56 }
 0x109   :  { %v193_v61 = vmul.f32 %v191_v59, %v180_v58 }
 0x10a   :  { %194 = vst [vmem:[%s308_s3] sm:$0xff] %v192_v60 }
 0x10b   :  { %195 = vst [vmem:[%s308_s3 + $0x8] sm:$0xff] %v193_v61 }
 0x10c   :  { %200 = vsyncpa [#allocation4], 1 }

</bundles_post_ra>
